<compile_context>
chip_gen: v6e
topology: v6e:2x2x1
jax: 0.10.0
libtpu: 0.0.40
codegen_flags: <defaults>
</compile_context>

<pallas_src>
import functools
import math

import jax
import jax.numpy as jnp
from jax import lax
from jax.experimental import pallas as pl
from jax.experimental.pallas import tpu as pltpu


def _mix32(x):
    """lowbias32 integer finalizer: strong avalanche on sequential uint32 counters."""
    x = x ^ (x >> jnp.uint32(16))
    x = x * jnp.uint32(0x7FEB352D)
    x = x ^ (x >> jnp.uint32(15))
    x = x * jnp.uint32(0x846CA68B)
    x = x ^ (x >> jnp.uint32(16))
    return x


def _add_noise_kernel(ratio, seed, T, Tb, D, x_ref, o_ref):
    # Grid position -> global element counter, so the result is deterministic and
    # independent of grid execution order / tiling (both axes are "parallel").
    n = pl.program_id(0)
    t = pl.program_id(1)
    base = (n * T + t * Tb) * D                                   # int32 scalar
    row = lax.broadcasted_iota(jnp.int32, (Tb, D), 0)
    col = lax.broadcasted_iota(jnp.int32, (Tb, D), 1)
    idx = (base + row * D + col).astype(jnp.uint32)               # unique mod 2**32

    s = jnp.uint32(seed & 0xFFFFFFFF)
    # Two decorrelated 32-bit streams (different seed folds) for Box-Muller.
    bits1 = _mix32(idx ^ (s * jnp.uint32(0x9E3779B9) + jnp.uint32(0x85EBCA6B)))
    bits2 = _mix32(idx ^ (s * jnp.uint32(0xC2B2AE35) + jnp.uint32(0x165667B1)))

    # 24-bit uniforms strictly inside (0, 1) -> log() below is always finite.
    inv24 = jnp.float32(1.0 / (1 << 24))
    u1 = ((bits1 >> jnp.uint32(8)).astype(jnp.int32).astype(jnp.float32)
          + jnp.float32(0.5)) * inv24
    u2 = ((bits2 >> jnp.uint32(8)).astype(jnp.int32).astype(jnp.float32)
          + jnp.float32(0.5)) * inv24

    # Box-Muller -> N(0, 1), one sample per element (log/sqrt/cos go to the EUP slot
    # and largely hide under the HBM DMA of this memory-bound elementwise op).
    r = jnp.sqrt(jnp.float32(-2.0) * jnp.log(u1))
    noise = r * jnp.cos(jnp.float32(2.0 * math.pi) * u2)

    out = x_ref[...].astype(jnp.float32) + jnp.float32(ratio) * noise
    o_ref[...] = out.astype(o_ref.dtype)


def _pick_time_block(T, frame_bytes, budget_bytes=2 << 20):
    """Largest divisor of T whose block fits the VMEM budget (prefer 8-aligned)."""
    divisors = [d for d in range(1, T + 1) if T % d == 0]
    fitting = [d for d in divisors if d * frame_bytes <= budget_bytes]
    if not fitting:
        return 1
    aligned = [d for d in fitting if d == T or d % 8 == 0]
    return max(aligned) if aligned else max(fitting)


def add_noise(video: jax.Array, ratio: float, seed: int = 0) -> jax.Array:
    """Pallas TPU equivalent of add_noise(ratio).forward(video) for 5D NTCHW."""
    if video.ndim != 5:
        raise Exception("Expects Video Tensor in 5D (NTCHW)")
    assert video.shape[2] == 3, "expects only 3 channel video tensor"
    N, T, C, H, W = video.shape

    # Layout plumbing: collapse (C, H, W) into one lane-dense last dim so stores are
    # full-width vst (3*16*16 = 768 = 6*128) instead of masked 16-lane partial stores.
    D = C * H * W
    x = video.reshape(N, T, D)

    # Several frames per grid step (block <= ~2 MiB) to amortize the ~0.35 us per-step
    # pipeline overhead; double-buffered in + out stays well under scoped VMEM on all
    # of v5e / v6e / v7x.
    Tb = _pick_time_block(T, D * x.dtype.itemsize)
    grid = (N, T // Tb)

    kernel = functools.partial(_add_noise_kernel, float(ratio), int(seed), T, Tb, D)

    out = pl.pallas_call(
        kernel,
        out_shape=jax.ShapeDtypeStruct((N, T, D), x.dtype),
        grid=grid,
        in_specs=[pl.BlockSpec((None, Tb, D), lambda n, t: (n, t, 0))],
        out_specs=pl.BlockSpec((None, Tb, D), lambda n, t: (n, t, 0)),
        compiler_params=pltpu.CompilerParams(
            # Pure elementwise op: every grid point writes a distinct block, so both
            # axes can be sharded across TensorCores (megacore / v7x dual-TC).
            dimension_semantics=("parallel", "parallel"),
        ),
    )(x)

    return out.reshape(N, T, C, H, W)


if __name__ == "__main__":
    key = jax.random.PRNGKey(0)
    ratio = 0.1
    # Small NTCHW video: N=2, T=8, C=3, H=16, W=16 (values in [0,1) like /255 frames).
    video = jax.random.uniform(key, (2, 8, 3, 16, 16), dtype=jnp.float32)

    out = jax.block_until_ready(add_noise(video, ratio, seed=0))

    assert out.shape == video.shape
    assert out.dtype == video.dtype
    assert bool(jnp.all(jnp.isfinite(out)))

    # Implied noise must be ~N(0,1) after removing the input and the ratio scale.
    noise = (out - video) / ratio
    m = float(jnp.mean(noise))
    s = float(jnp.std(noise))
    assert abs(m) < 0.06, f"noise mean off: {m}"
    assert abs(s - 1.0) < 0.08, f"noise std off: {s}"

    # Deterministic w.r.t. the seed (independent of grid-step execution order).
    out2 = jax.block_until_ready(add_noise(video, ratio, seed=0))
    assert jnp.array_equal(out, out2)

    # Different seed -> different noise.
    out3 = jax.block_until_ready(add_noise(video, ratio, seed=1))
    assert not jnp.array_equal(out, out3)

    print("KERNEL_OK")
</pallas_src>

<mosaic_0001>
module attributes {stable_mosaic.version = 11 : i64} {
  func.func @_add_noise_kernel(%arg0: i32, %arg1: i32, %arg2: memref<1x8x768xf32, #tpu.memory_space<vmem>>, %arg3: memref<1x8x768xf32, #tpu.memory_space<vmem>>) attributes {dimension_semantics = [#tpu.dimension_semantics<parallel>, #tpu.dimension_semantics<parallel>], iteration_bounds = array<i64: 2, 1>, scalar_prefetch = 0 : i64, scratch_operands = 0 : i64, tpu.core_type = #tpu.core_type<tc>, window_params = [{transform_indices = @transform_0, window_bounds = array<i64: 1, 8, 768>}, {transform_indices = @transform_1, window_bounds = array<i64: 1, 8, 768>}]} {
    %c8_i32 = arith.constant 8 : i32
    %0 = arith.muli %arg0, %c8_i32 : i32
    %c8_i32_0 = arith.constant 8 : i32
    %1 = arith.muli %arg1, %c8_i32_0 : i32
    %2 = arith.addi %0, %1 : i32
    %c768_i32 = arith.constant 768 : i32
    %3 = arith.muli %2, %c768_i32 : i32
    %4 = tpu.iota {dimensions = array<i32: 0>} : vector<8x768xi32>
    %5 = tpu.iota {dimensions = array<i32: 1>} : vector<8x768xi32>
    %c768_i32_1 = arith.constant 768 : i32
    %6 = vector.broadcast %c768_i32_1 : i32 to vector<8x768xi32>
    %7 = arith.muli %4, %6 : vector<8x768xi32>
    %8 = vector.broadcast %3 : i32 to vector<8x768xi32>
    %9 = arith.addi %8, %7 : vector<8x768xi32>
    %10 = arith.addi %9, %5 : vector<8x768xi32>
    %c0_i32 = arith.constant 0 : i32
    %c-1640531527_i32 = arith.constant -1640531527 : i32
    %11 = arith.muli %c0_i32, %c-1640531527_i32 : i32
    %c-2048144789_i32 = arith.constant -2048144789 : i32
    %12 = arith.addi %11, %c-2048144789_i32 : i32
    %13 = vector.broadcast %12 : i32 to vector<8x768xi32>
    %14 = arith.xori %10, %13 : vector<8x768xi32>
    %c16_i32 = arith.constant 16 : i32
    %15 = vector.broadcast %c16_i32 : i32 to vector<8x768xi32>
    %16 = arith.shrui %14, %15 : vector<8x768xi32>
    %17 = arith.xori %14, %16 : vector<8x768xi32>
    %c2146121005_i32 = arith.constant 2146121005 : i32
    %18 = vector.broadcast %c2146121005_i32 : i32 to vector<8x768xi32>
    %19 = arith.muli %17, %18 : vector<8x768xi32>
    %c15_i32 = arith.constant 15 : i32
    %20 = vector.broadcast %c15_i32 : i32 to vector<8x768xi32>
    %21 = arith.shrui %19, %20 : vector<8x768xi32>
    %22 = arith.xori %19, %21 : vector<8x768xi32>
    %c-2073254261_i32 = arith.constant -2073254261 : i32
    %23 = vector.broadcast %c-2073254261_i32 : i32 to vector<8x768xi32>
    %24 = arith.muli %22, %23 : vector<8x768xi32>
    %c16_i32_2 = arith.constant 16 : i32
    %25 = vector.broadcast %c16_i32_2 : i32 to vector<8x768xi32>
    %26 = arith.shrui %24, %25 : vector<8x768xi32>
    %27 = arith.xori %24, %26 : vector<8x768xi32>
    %c0_i32_3 = arith.constant 0 : i32
    %c-1028477387_i32 = arith.constant -1028477387 : i32
    %28 = arith.muli %c0_i32_3, %c-1028477387_i32 : i32
    %c374761393_i32 = arith.constant 374761393 : i32
    %29 = arith.addi %28, %c374761393_i32 : i32
    %30 = vector.broadcast %29 : i32 to vector<8x768xi32>
    %31 = arith.xori %10, %30 : vector<8x768xi32>
    %c16_i32_4 = arith.constant 16 : i32
    %32 = vector.broadcast %c16_i32_4 : i32 to vector<8x768xi32>
    %33 = arith.shrui %31, %32 : vector<8x768xi32>
    %34 = arith.xori %31, %33 : vector<8x768xi32>
    %c2146121005_i32_5 = arith.constant 2146121005 : i32
    %35 = vector.broadcast %c2146121005_i32_5 : i32 to vector<8x768xi32>
    %36 = arith.muli %34, %35 : vector<8x768xi32>
    %c15_i32_6 = arith.constant 15 : i32
    %37 = vector.broadcast %c15_i32_6 : i32 to vector<8x768xi32>
    %38 = arith.shrui %36, %37 : vector<8x768xi32>
    %39 = arith.xori %36, %38 : vector<8x768xi32>
    %c-2073254261_i32_7 = arith.constant -2073254261 : i32
    %40 = vector.broadcast %c-2073254261_i32_7 : i32 to vector<8x768xi32>
    %41 = arith.muli %39, %40 : vector<8x768xi32>
    %c16_i32_8 = arith.constant 16 : i32
    %42 = vector.broadcast %c16_i32_8 : i32 to vector<8x768xi32>
    %43 = arith.shrui %41, %42 : vector<8x768xi32>
    %44 = arith.xori %41, %43 : vector<8x768xi32>
    %c8_i32_9 = arith.constant 8 : i32
    %45 = vector.broadcast %c8_i32_9 : i32 to vector<8x768xi32>
    %46 = arith.shrui %27, %45 : vector<8x768xi32>
    %47 = arith.sitofp %46 : vector<8x768xi32> to vector<8x768xf32>
    %cst = arith.constant 5.000000e-01 : f32
    %48 = vector.broadcast %cst : f32 to vector<8x768xf32>
    %49 = arith.addf %47, %48 : vector<8x768xf32>
    %cst_10 = arith.constant 5.96046448E-8 : f32
    %50 = vector.broadcast %cst_10 : f32 to vector<8x768xf32>
    %51 = arith.mulf %49, %50 : vector<8x768xf32>
    %c8_i32_11 = arith.constant 8 : i32
    %52 = vector.broadcast %c8_i32_11 : i32 to vector<8x768xi32>
    %53 = arith.shrui %44, %52 : vector<8x768xi32>
    %54 = arith.sitofp %53 : vector<8x768xi32> to vector<8x768xf32>
    %cst_12 = arith.constant 5.000000e-01 : f32
    %55 = vector.broadcast %cst_12 : f32 to vector<8x768xf32>
    %56 = arith.addf %54, %55 : vector<8x768xf32>
    %cst_13 = arith.constant 5.96046448E-8 : f32
    %57 = vector.broadcast %cst_13 : f32 to vector<8x768xf32>
    %58 = arith.mulf %56, %57 : vector<8x768xf32>
    %59 = math.log %51 : vector<8x768xf32>
    %cst_14 = arith.constant -2.000000e+00 : f32
    %60 = vector.broadcast %cst_14 : f32 to vector<8x768xf32>
    %61 = arith.mulf %60, %59 : vector<8x768xf32>
    %62 = math.sqrt %61 : vector<8x768xf32>
    %cst_15 = arith.constant 6.28318548 : f32
    %63 = vector.broadcast %cst_15 : f32 to vector<8x768xf32>
    %64 = arith.mulf %63, %58 : vector<8x768xf32>
    %65 = math.cos %64 : vector<8x768xf32>
    %66 = arith.mulf %62, %65 : vector<8x768xf32>
    %c0 = arith.constant 0 : index
    %c0_16 = arith.constant 0 : index
    %c0_17 = arith.constant 0 : index
    %67 = vector.load %arg2[%c0, %c0_16, %c0_17] : memref<1x8x768xf32, #tpu.memory_space<vmem>>, vector<1x8x768xf32>
    %68 = vector.shape_cast %67 : vector<1x8x768xf32> to vector<8x768xf32>
    %cst_18 = arith.constant 1.000000e-01 : f32
    %69 = vector.broadcast %cst_18 : f32 to vector<8x768xf32>
    %70 = arith.mulf %69, %66 : vector<8x768xf32>
    %71 = arith.addf %68, %70 : vector<8x768xf32>
    %c0_19 = arith.constant 0 : index
    %c0_20 = arith.constant 0 : index
    %c0_21 = arith.constant 0 : index
    %72 = vector.load %arg3[%c0_19, %c0_20, %c0_21] : memref<1x8x768xf32, #tpu.memory_space<vmem>>, vector<1x8x768xf32>
    %73 = vector.shape_cast %72 : vector<1x8x768xf32> to vector<8x768xf32>
    %74 = vector.shape_cast %71 : vector<8x768xf32> to vector<1x8x768xf32>
    tpu.vector_store %arg3[%c0_19, %c0_20, %c0_21], %74 {strides = array<i32>} : memref<1x8x768xf32, #tpu.memory_space<vmem>>, vector<1x8x768xf32>,
    return
  }
  func.func @transform_0(%arg0: i32, %arg1: i32) -> (i32, i32, i32) {
    %c0_i32 = arith.constant 0 : i32
    %c0_i32_0 = arith.constant 0 : i32
    return %arg0, %arg1, %c0_i32 : i32, i32, i32
  }
  func.func @transform_1(%arg0: i32, %arg1: i32) -> (i32, i32, i32) {
    %c0_i32 = arith.constant 0 : i32
    %c0_i32_0 = arith.constant 0 : i32
    return %arg0, %arg1, %c0_i32 : i32, i32, i32
  }
}

</mosaic_0001>

<bundles_post_ra>
// kernel: tpu_custom_call.1
= control target key start
LH: loop header
LB: loop body
LE: loop exit
PB: predicated region body
PF: predicated region fallthrough
CT: control target
= control target key end

     0   :  { %6 = vsyncpa [#allocation3], 0  ;;  %s2145_s0 = inlined_call_operand.hbm [shape: f32[2,8,768], index: 0, kind: input, shape index: {}]   ;;  %s2146_s1 = inlined_call_operand.hbm [shape: f32[2,8,768], index: 1, kind: output, shape index: {}]  }
   0x1   :  { %8 = vsyncpa [#allocation3 + $0x1], 0 }
   0x2   :  { %9 = vsyncpa [#allocation4], 0 }
   0x3   :  { %11 = vsyncpa [#allocation4 + $0x1], 0  ;;  %s1451_s6 = smov 0   ;;  %s1453_s7 = smov 0  }
   0x4   :  { %s1455_s8 = smov 0   ;;  %s1457_s9 = smov 0  }
   0x5   :  { %s1459_s10 = smov 0   ;;  %s1461_s11 = smov 0  }
   0x6 LB: > { %s1144_s12 = sadd.s32 4294967295, %s1431_s11   ;;  %s1145_s13 = sadd.s32 4294967294, %s1431_s11   ;;  %s1431_s11 = sphi %s1461_s11, %s17_s11   ;;  %s1427_s10 = sphi %s1459_s10, %s2168_s10   ;;  %s1423_s9 = sphi %s1457_s9, %s2167_s9   ;;  %s1419_s8 = sphi %s1455_s8, %s2166_s8   ;;  %s1415_s7 = sphi %s1453_s7, %s2165_s7   ;;  %s1411_s6 = sphi %s1451_s6, %s2164_s6  }
   0x7   : > { %s29_s14 = sadd.s32 1, %s1427_s10  ;;  %s38_s15 = sadd.s32 1, %s1419_s8 }
   0x8   : > { %p31_p0 = scmp.ge.s32.totalorder %s29_s14, 2  ;;  %p45_p1 = scmp.ne.s32.totalorder %s1419_s8, %s1415_s7 }
   0x9   : > { %p46_p2 = scmp.eq.s32.totalorder %s1431_s11, 0  ;;  %p51_p3 = scmp.ne.s32.totalorder %s1415_s7, %s1411_s6 }
   0xa   : > { %s2170_s14 = smov (%p31_p0, %s29_s14), 0  ;;  %p52_p5 = scmp.eq.s32.totalorder %s1144_s12, 0 }
   0xb   : > { %p1492_p4 = por %p46_p2, %p45_p1  ;;  %s33_s17 = ssub.s32 %s1427_s10, %s2170_s14 }
   0xc   : > { %p77_p6 = scmp.eq.s32.totalorder %s1144_s12, 1  ;;  %p36_p7 = scmp.eq.s32.totalorder %s33_s17, 0 }
   0xd   : > { %p1498_p8 = por %p52_p5, %p51_p3  ;;  %p83_p10 = scmp.eq.s32.totalorder %s1145_s13, 1 }
   0xe   : > { %p1502_p9 = por %p77_p6, %p45_p1  ;;  %p1219_p13 = scmp.lt.s32.totalorder %s1431_s11, 2 }
   0xf   : > { %s1507_s20 = scalar_select %p36_p7, %s1419_s8, %s38_s15  }
  0x10   : > { %p1509_p11 = por %p83_p10, %p51_p3  ;;  %s103_s22 = sand.u32 1, %s1419_s8  }
  0x11   : > { %s1179_s23 = smul.u32 48, %s103_s22  ;;  %p1519_p0 = pnand %p1219_p13, %p1492_p4 }
  0x12   : > { %s2150_s21 = scalar_select %p1509_p11, 1, 0 }
  0x13   : > { %s1180_s24 = smul.u32 768, %s1427_s10  ;;  %p1149_p1 = scmp.ge.s32.totalorder %s1431_s11, 1 }
  0x14   : > { %s107_s29 = scalar_lea.vmem [#allocation2], %s1179_s23  ;;  %s104_s2 = scalar_lea.sflag [#allocation3], %s103_s22 }
  0x15   : > { %s115_s28 = scalar_lea.hbm %s2145_s0, %s1180_s24  ;;  %s117_s30 = sshll.u32 %s107_s29, 4  ;;  %s118_s30 = int_to_ptr.vmem [resolvable:$true] %s117_s30 }
  0x16   : > { %p1325_p2 = pneg %p1519_p0  ;;  %s1336_s3 = scalar_lea.vmem %s118_s30, 768 }
  0x17   : > { %p1337_p3 = scmp.ne.s32.totalorder %s118_s30, %s1336_s3  ;;  %s1433_s4 = smov [#allocation2]  }
  0x18   : > { %s1341_s5 = sshll.u32 %s1433_s4, 4  ;;  %s1342_s5 = int_to_ptr.vmem [resolvable:$false] %s1341_s5 }
  0x19   : > { %p1339_p5 = pnand %p1337_p3, %p1325_p2  ;;  %s1343_s12 = scalar_lea.vmem %s1342_s5, 1536 }
  0x1a   : > { %p1344_p4 = scmp.lt.s32.totalorder %s118_s30, %s1342_s5  ;;  %p1345_p7 = scmp.lt.s32.totalorder %s1343_s12, %s1336_s3 }
  0x1b   : > { %p1340_p6 = pneg %p1339_p5 }
  0x1c   : > { %p1346_p10 = por %p1345_p7, %p1344_p4 }
  0x1e   : > { %p1347_p13 = pnand %p1346_p10, %p1340_p6 }
  0x20   : > { %1350 = shalt.err (!%p1347_p13)
}
  0x21   : > { %1214 = dma.hbm_to_vmem [thread:$0]  (!%p1519_p0), %s115_s28, 768, %s118_s30, %s104_s2  }
  0x22   : > { %p122_p12 = scmp.lt.s32.totalorder %s1431_s11, 3 }
  0x24   : > { %p123_p11 = pnand %p1149_p1, %p122_p12 }
  0x25   : > { %s1535_s13 = sand.u32 (!%p123_p11), 1, %s1415_s7  }
  0x26   : > { %126 = sbr.rel (%p123_p11) target bundleno = 312 (0x138), region = 24  ;;  %s129_s16 = scalar_lea.sflag (!%p123_p11), [#allocation3], %s1535_s13 }
  0x27   : > { %s1181_s15 = smul.u32 (!%p123_p11), 48, %s1535_s13 }
  0x29   : > { %s1541_s17 = scalar_lea.vmem (!%p123_p11), [#allocation2], %s1181_s15 }
  0x2b   : > { %1402 = dma.done.wait (%p1498_p8), %s129_s16, 768  }
  0x2c   : > { %1404 = vsyncadd (%p1498_p8), %s129_s16, 4294966528  ;;  %s1151_s22 = smul.u32 6144, %s1423_s9  ;;  %v155_v0 = vlaneseq  ;;  %s1971_s18 = scalar_lea.vmem [#allocation5], %s1181_s15 }
  0x2d   : > { %s1206_s23 = smul.u32 768, %s1423_s9  ;;  %s1060_s24 = sshll.u32 %s1971_s18, 4  ;;  %s1061_s24 = int_to_ptr.vmem [resolvable:$true] %s1060_s24 }
  0x2e   : > { %v156_v1 = vshrl.u32 %v155_v0, 7  ;;  %v158_v2 = vand.u32 127, %v155_v0  ;;  %v165_v3 = vstv %s1151_s22  ;;  %s1044_s28 = scalar_lea.sflag [#allocation4], %s1535_s13  ;;  %s1351_s29 = scalar_lea.vmem %s1061_s24, 768 }
  0x2f   : > { %s1058_s27 = scalar_lea.hbm %s2146_s1, %s1206_s23  ;;  %p1352_p8 = scmp.ne.s32.totalorder %s1061_s24, %s1351_s29 }
  0x30   : > { %v159_v4 = vadd.s32 128, %v158_v2  ;;  %v164_v5 = vmul.u32 768, %v156_v1  ;;  %v163_v6 = vadd.s32 640, %v158_v2  ;;  %v160_v11 = vadd.s32 256, %v158_v2  ;;  %s1440_s30 = smov [#allocation5]  }
  0x31   : > { %v161_v12 = vadd.s32 384, %v158_v2  ;;  %v162_v15 = vadd.s32 512, %v158_v2  ;;  %p1353_p11 = pnand %p1352_p8, %p1502_p9  ;;  %s1355_s2 = sshll.u32 %s1440_s30, 4  ;;  %s1356_s2 = int_to_ptr.vmem [resolvable:$false] %s1355_s2 }
  0x32   : > { %v166_v7 = vadd.s32 %v165_v3, %v164_v5  ;;  %s1357_s9 = scalar_lea.vmem %s1356_s2, 1536  ;;  %p1358_p0 = scmp.lt.s32.totalorder %s1061_s24, %s1356_s2 }
  0x33   : > { %p1354_p12 = pneg %p1353_p11  ;;  %p1359_p1 = scmp.lt.s32.totalorder %s1357_s9, %s1351_s29 }
  0x34   : > { %v167_v8 = vadd.s32 %v166_v7, %v158_v2  ;;  %v168_v9 = vadd.s32 %v166_v7, %v159_v4  ;;  %v172_v10 = vadd.s32 %v166_v7, %v163_v6  ;;  %v169_v18 = vadd.s32 %v166_v7, %v160_v11 }
  0x35   : > { %v170_v19 = vadd.s32 %v166_v7, %v161_v12  ;;  %v171_v21 = vadd.s32 %v166_v7, %v162_v15  ;;  %p1360_p2 = por %p1359_p1, %p1358_p0 }
  0x36   : > { %v173_v13 = vxor.u32 2246822507, %v167_v8  ;;  %v174_v14 = vxor.u32 2246822507, %v168_v9  ;;  %v175_v22 = vxor.u32 2246822507, %v169_v18 }
  0x37   : > { %v176_v23 = vxor.u32 2246822507, %v170_v19  ;;  %v227_v25 = vxor.u32 374761393, %v167_v8  ;;  %v228_v26 = vxor.u32 374761393, %v168_v9  ;;  %p1361_p3 = pnand %p1360_p2, %p1354_p12 }
  0x38   : > { %v179_v16 = vshrl.u32 %v173_v13, 16  ;;  %v180_v17 = vshrl.u32 %v174_v14, 16  ;;  %v177_v27 = vxor.u32 2246822507, %v171_v21  ;;  %v229_v29 = vxor.u32 374761393, %v169_v18 }
  0x39   : > { %v181_v30 = vshrl.u32 %v175_v22, 16  ;;  %v182_v31 = vshrl.u32 %v176_v23, 16  ;;  %v230_v32 = vxor.u32 374761393, %v170_v19  ;;  %v231_v33 = vxor.u32 374761393, %v171_v21 }
  0x3a   : > { %v185_v20 = vxor.u32 %v179_v16, %v173_v13  ;;  %v186_v24 = vxor.u32 %v180_v17, %v174_v14  ;;  %v233_v35 = vshrl.u32 %v227_v25, 16  ;;  %v234_v36 = vshrl.u32 %v228_v26, 16 }
  0x3b   : > { %v183_v37 = vshrl.u32 %v177_v27, 16  ;;  %v232_v39 = vxor.u32 374761393, %v172_v10  ;;  %v178_v40 = vxor.u32 2246822507, %v172_v10  ;;  %v235_v41 = vshrl.u32 %v229_v29, 16 }
  0x3c   : > { %v191_v28 = vmul.u32 2146121005, %v185_v20  ;;  %v192_v34 = vmul.u32 2146121005, %v186_v24  ;;  %v187_v42 = vxor.u32 %v181_v30, %v175_v22  ;;  %v188_v43 = vxor.u32 %v182_v31, %v176_v23 }
  0x3d   : > { %v236_v44 = vshrl.u32 %v230_v32, 16  ;;  %v237_v45 = vshrl.u32 %v231_v33, 16  ;;  %v239_v47 = vxor.u32 %v233_v35, %v227_v25  ;;  %v240_v48 = vxor.u32 %v234_v36, %v228_v26 }
  0x3e   : > { %v197_v38 = vshrl.u32 %v191_v28, 15  ;;  %v198_v46 = vshrl.u32 %v192_v34, 15  ;;  %v189_v49 = vxor.u32 %v183_v37, %v177_v27  ;;  %v238_v51 = vshrl.u32 %v232_v39, 16 }
  0x3f   : > { %v184_v52 = vshrl.u32 %v178_v40, 16  ;;  %v241_v53 = vxor.u32 %v235_v41, %v229_v29  ;;  %v193_v54 = vmul.u32 2146121005, %v187_v42  ;;  %v194_v55 = vmul.u32 2146121005, %v188_v43 }
  0x40   : > { %v203_v50 = vxor.u32 %v197_v38, %v191_v28  ;;  %v242_v56 = vxor.u32 %v236_v44, %v230_v32  ;;  %v243_v57 = vxor.u32 %v237_v45, %v231_v33  ;;  %v204_v58 = vxor.u32 %v198_v46, %v192_v34 }
  0x41   : > { %v245_v59 = vmul.u32 2146121005, %v239_v47  ;;  %v246_v60 = vmul.u32 2146121005, %v240_v48  ;;  %v244_v63 = vxor.u32 %v238_v51, %v232_v39  ;;  %v190_v3 = vxor.u32 %v184_v52, %v178_v40 }
  0x42   : > { %v195_v61 = vmul.u32 2146121005, %v189_v49  ;;  %v209_v62 = vmul.u32 2221713035, %v203_v50  ;;  %v199_v6 = vshrl.u32 %v193_v54, 15  ;;  %v200_v10 = vshrl.u32 %v194_v55, 15 }
  0x43   : > { %v247_v0 = vmul.u32 2146121005, %v241_v53  ;;  %v251_v1 = vshrl.u32 %v245_v59, 15  ;;  %v252_v2 = vshrl.u32 %v246_v60, 15  ;;  %v248_v4 = vmul.u32 2146121005, %v242_v56 }
  0x44   : > { %v249_v5 = vmul.u32 2146121005, %v243_v57  ;;  %v210_v7 = vmul.u32 2221713035, %v204_v58  ;;  %v201_v11 = vshrl.u32 %v195_v61, 15  ;;  %v215_v12 = vshrl.u32 %v209_v62, 16 }
  0x45   : > { %v257_v8 = vxor.u32 %v251_v1, %v245_v59  ;;  %v258_v9 = vxor.u32 %v252_v2, %v246_v60  ;;  %v250_v13 = vmul.u32 2146121005, %v244_v63  ;;  %v253_v14 = vshrl.u32 %v247_v0, 15 }
  0x46   : > { %v254_v17 = vshrl.u32 %v248_v4, 15  ;;  %v255_v18 = vshrl.u32 %v249_v5, 15  ;;  %v205_v19 = vxor.u32 %v199_v6, %v193_v54  ;;  %v216_v20 = vshrl.u32 %v210_v7, 16 }
  0x47   : > { %v263_v15 = vmul.u32 2221713035, %v257_v8  ;;  %v264_v16 = vmul.u32 2221713035, %v258_v9  ;;  %v206_v24 = vxor.u32 %v200_v10, %v194_v55  ;;  %v207_v25 = vxor.u32 %v201_v11, %v195_v61 }
  0x48   : > { %v196_v23 = vmul.u32 2146121005, %v190_v3  ;;  %v221_v26 = vxor.u32 %v215_v12, %v209_v62  ;;  %v256_v27 = vshrl.u32 %v250_v13, 15  ;;  %v259_v28 = vxor.u32 %v253_v14, %v247_v0 }
  0x49   : > { %v269_v21 = vshrl.u32 %v263_v15, 16  ;;  %v270_v22 = vshrl.u32 %v264_v16, 16  ;;  %v260_v31 = vxor.u32 %v254_v17, %v248_v4  ;;  %v261_v32 = vxor.u32 %v255_v18, %v249_v5 }
  0x4a   : > { %v211_v33 = vmul.u32 2221713035, %v205_v19  ;;  %v222_v34 = vxor.u32 %v216_v20, %v210_v7  ;;  %v202_v35 = vshrl.u32 %v196_v23, 15  ;;  %v212_v36 = vmul.u32 2221713035, %v206_v24 }
  0x4b   : > { %v275_v29 = vxor.u32 %v269_v21, %v263_v15  ;;  %v276_v30 = vxor.u32 %v270_v22, %v264_v16  ;;  %v213_v37 = vmul.u32 2221713035, %v207_v25  ;;  %v281_v38 = vshrl.u32 %v221_v26, 8 }
  0x4c   : > { %v262_v39 = vxor.u32 %v256_v27, %v250_v13  ;;  %v265_v40 = vmul.u32 2221713035, %v259_v28  ;;  %v266_v43 = vmul.u32 2221713035, %v260_v31  ;;  %v282_v45 = vshrl.u32 %v222_v34, 8 }
  0x4d   : > { %v305_v41 = vshrl.u32 %v275_v29, 8  ;;  %v306_v42 = vshrl.u32 %v276_v30, 8  ;;  %v267_v44 = vmul.u32 2221713035, %v261_v32  ;;  %v208_v48 = vxor.u32 %v202_v35, %v196_v23 }
  0x4e   : > { %v217_v49 = vshrl.u32 %v211_v33, 16  ;;  %v218_v50 = vshrl.u32 %v212_v36, 16  ;;  %v287_v51 = vcvt.s32.f32 %v281_v38  ;;  %v268_v52 = vmul.u32 2221713035, %v262_v39 }
  0x4f   : > { %v311_v46 = vcvt.s32.f32 %v305_v41  ;;  %v312_v47 = vcvt.s32.f32 %v306_v42  ;;  %v271_v53 = vshrl.u32 %v265_v40, 16  ;;  %v219_v56 = vshrl.u32 %v213_v37, 16 }
  0x50   : > { %v272_v57 = vshrl.u32 %v266_v43, 16  ;;  %v273_v58 = vshrl.u32 %v267_v44, 16  ;;  %v288_v59 = vcvt.s32.f32 %v282_v45  ;;  %v214_v62 = vmul.u32 2221713035, %v208_v48 }
  0x51   : > { %v317_v54 = vadd.f32 0.5, %v311_v46  ;;  %v318_v55 = vadd.f32 0.5, %v312_v47  ;;  %v223_v63 = vxor.u32 %v217_v49, %v211_v33  ;;  %v224_v0 = vxor.u32 %v218_v50, %v212_v36 }
  0x52   : > { %v274_v1 = vshrl.u32 %v268_v52, 16  ;;  %v277_v2 = vxor.u32 %v271_v53, %v265_v40  ;;  %v293_v3 = vadd.f32 0.5, %v287_v51  ;;  %v225_v5 = vxor.u32 %v219_v56, %v213_v37 }
  0x53   : > { %v323_v60 = vmul.f32 5.9604645e-08, %v317_v54  ;;  %v324_v61 = vmul.f32 5.9604645e-08, %v318_v55  ;;  %v278_v6 = vxor.u32 %v272_v57, %v266_v43  ;;  %v279_v7 = vxor.u32 %v273_v58, %v267_v44 }
  0x54   : > { %v294_v9 = vadd.f32 0.5, %v288_v59  ;;  %v220_v10 = vshrl.u32 %v214_v62, 16  ;;  %v283_v11 = vshrl.u32 %v223_v63, 8  ;;  %v284_v12 = vshrl.u32 %v224_v0, 8 }
  0x55   : > { %v1548_v4 = vmul.f32 6.2831855, %v323_v60  ;;  %v1550_v8 = vmul.f32 6.2831855, %v324_v61  ;;  %v280_v14 = vxor.u32 %v274_v1, %v268_v52  ;;  %v299_v15 = vmul.f32 5.9604645e-08, %v293_v3 }
  0x56   : > { %v307_v16 = vshrl.u32 %v277_v2, 8  ;;  %v285_v18 = vshrl.u32 %v225_v5, 8  ;;  %v308_v19 = vshrl.u32 %v278_v6, 8  ;;  %v309_v20 = vshrl.u32 %v279_v7, 8 }
  0x57   : > { %v398_v13 = vand.u32 2139095040, %v1548_v4  ;;  %v501_v17 = vand.u32 2139095040, %v1550_v8  ;;  %v300_v22 = vmul.f32 5.9604645e-08, %v294_v9  ;;  %v226_v23 = vxor.u32 %v220_v10, %v214_v62 }
  0x58   : > { %v289_v24 = vcvt.s32.f32 %v283_v11  ;;  %v290_v27 = vcvt.s32.f32 %v284_v12  ;;  %v310_v28 = vshrl.u32 %v280_v14, 8  ;;  %v313_v29 = vcvt.s32.f32 %v307_v16 }
  0x59   : > { %v399_v21 = vshrl.u32 %v398_v13, 23  ;;  %v502_v26 = vshrl.u32 %v501_v17, 23  ;;  %1275 = vlog2.f32 %v299_v15  ;;  %v291_v30 = vcvt.s32.f32 %v285_v18 }
  0x5a   : > { %v314_v31 = vcvt.s32.f32 %v308_v19  ;;  %v315_v32 = vcvt.s32.f32 %v309_v20  ;;  %1277 = vlog2.f32 %v300_v22  ;;  %v286_v33 = vshrl.u32 %v226_v23, 8 }
  0x5b   : > { %v1152_v25 = vadd.s32 4294967169, %v399_v21  ;;  %v295_v34 = vadd.f32 0.5, %v289_v24  ;;  %v1156_v36 = vadd.s32 4294967169, %v502_v26  ;;  %v296_v37 = vadd.f32 0.5, %v290_v27 }
  0x5c   : > { %v316_v38 = vcvt.s32.f32 %v310_v28  ;;  %v319_v39 = vadd.f32 0.5, %v313_v29  ;;  %v297_v40 = vadd.f32 0.5, %v291_v30  ;;  %v320_v41 = vadd.f32 0.5, %v314_v31 }
  0x5d   : > { %v405_v35 = vadd.s32 1, %v1152_v25  ;;  %v321_v42 = vadd.f32 0.5, %v315_v32  ;;  %v395_v43 = vand.u32 2147483647, %v1548_v4  ;;  %v292_v44 = vcvt.s32.f32 %v286_v33 }
  0x5e   : > { %v301_v45 = vmul.f32 5.9604645e-08, %v295_v34  ;;  %v508_v46 = vadd.s32 1, %v1156_v36  ;;  %v302_v47 = vmul.f32 5.9604645e-08, %v296_v37  ;;  %v322_v48 = vadd.f32 0.5, %v316_v38 }
  0x5f   : > { %vm406_vm0 = vcmp.gt.s32.totalorder %v405_v35, 0  ;;  %v325_v49 = vmul.f32 5.9604645e-08, %v319_v39  ;;  %v498_v50 = vand.u32 2147483647, %v1550_v8  ;;  %v303_v51 = vmul.f32 5.9604645e-08, %v297_v40 }
  0x60   : > { %v326_v52 = vmul.f32 5.9604645e-08, %v320_v41  ;;  %v327_v53 = vmul.f32 5.9604645e-08, %v321_v42  ;;  %v402_v54 = vand.u32 8388607, %v395_v43  ;;  %v407_v55 = vsel %vm406_vm0, %v405_v35, 0 }
  0x61   : > { %v1558_v56 = vadd.f32 0.5, %v292_v44  ;;  %1279 = vlog2.f32 %v301_v45  ;;  %vm509_vm1 = vcmp.gt.s32.totalorder %v508_v46, 0  ;;  %v1560_v57 = vmul.f32 5.9604645e-08, %v322_v48 }
  0x62   : > { %1281 = vlog2.f32 %v302_v47  ;;  %v1562_v58 = vmul.f32 6.2831855, %v325_v49  ;;  %v505_v59 = vand.u32 8388607, %v498_v50  ;;  %v1566_v61 = vmul.f32 6.2831855, %v326_v52 }
  0x63   : > { %1283 = vlog2.f32 %v303_v51  ;;  %v1568_v62 = vmul.f32 6.2831855, %v327_v53  ;;  %v409_v63 = vand.u32 31, %v407_v55  ;;  %v403_v0 = vor.u32 8388608, %v402_v54 }
  0x64   : > { %v1570_v1 = vshrl.u32 %v407_v55, 5  ;;  %v1572_v2 = vsel %vm509_vm1, %v508_v46, 0  ;;  %v601_v3 = vand.u32 2147483647, %v1562_v58  ;;  %v1434_v7 = vmov 683565275  }
  0x65   : > { %v410_v6 = vsub.s32 32, %v409_v63  ;;  %v412_v9 = vshll.u32 %v1434_v7, %v409_v63  ;;  %v1435_v10 = vmov 2475754826   ;;  %v1436_v12 = vmov 2131351028  }
  0x66   : > { %v1276_v60 = vpop.eup %1275  ;;  %v415_v11 = vshll.u32 %v1435_v10, %v409_v63  ;;  %v418_v13 = vshll.u32 %v1436_v12, %v409_v63  ;;  %v1437_v15 = vmov 2102212464   ;;  %v1438_v17 = vmov 920167782  }
  0x67   : > { %v1278_v5 = vpop.eup %1277  ;;  %v330_v14 = vmul.f32 0.6931472, %v1276_v60  ;;  %v421_v16 = vshll.u32 %v1437_v15, %v409_v63  ;;  %v424_v18 = vshll.u32 %v1438_v17, %v409_v63  ;;  %v506_v19 = vor.u32 8388608, %v505_v59 }
  0x68   : > { %v413_v20 = vshrl.u32 %v1435_v10, %v410_v6  ;;  %v416_v21 = vshrl.u32 %v1436_v12, %v410_v6  ;;  %v419_v22 = vshrl.u32 %v1437_v15, %v410_v6  ;;  %v512_v23 = vand.u32 31, %v1572_v2 }
  0x69   : > { %v332_v24 = vmul.f32 0.6931472, %v1278_v5  ;;  %v422_v25 = vshrl.u32 %v1438_v17, %v410_v6  ;;  %v1439_v26 = vmov 1326507024   ;;  %v604_v28 = vand.u32 2139095040, %v1562_v58 }
  0x6a   : > { %v425_v27 = vshrl.u32 %v1439_v26, %v410_v6  ;;  %v414_v29 = vor.u32 %v413_v20, %v412_v9  ;;  %v417_v30 = vor.u32 %v416_v21, %v415_v11  ;;  %v420_v31 = vor.u32 %v419_v22, %v418_v13 }
  0x6b   : > { %vm430_vm2 = vcmp.lt.s32.totalorder %v1570_v1, 4  ;;  %v1588_v32 = vmul.f32 -2.0, %v330_v14  ;;  %v423_v33 = vor.u32 %v422_v25, %v421_v16  ;;  %vm427_vm3 = vcmp.lt.s32.totalorder %v1570_v1, 1 }
  0x6c   : > { %vm429_vm4 = vcmp.lt.s32.totalorder %v1570_v1, 3  ;;  %v411_v34 = vshrl.u32 %v1434_v7, %v410_v6  ;;  %v426_v35 = vor.u32 %v425_v27, %v424_v18  ;;  %v513_v36 = vsub.s32 32, %v512_v23 }
  0x6d   : > { %v1595_v37 = vand.u32 8388607, %v601_v3  ;;  %v432_v38 = vsel %vm430_vm2, %v420_v31, 2102212464  ;;  %v436_v39 = vsel %vm430_vm2, %v423_v33, 920167782  ;;  %v435_v44 = vsel %vm427_vm3, %v414_v29, %v417_v30 }
  0x6e   : > { %v443_v40 = vshll.u32 %v403_v0, 8  ;;  %v605_v41 = vshrl.u32 %v604_v28, 23  ;;  %v1601_v42 = vmul.f32 -2.0, %v332_v24  ;;  %vm428_vm5 = vcmp.lt.s32.totalorder %v1570_v1, 2  ;;  %v1280_v46 = vpop.eup %1279 }
  0x6f   : > { %v437_v45 = vsel %vm429_vm4, %v420_v31, %v436_v39  ;;  %1285 = vrsqrt.f32 %v1588_v32  ;;  %v439_v47 = vsel %vm427_vm3, %v417_v30, %v420_v31  ;;  %v515_v48 = vshll.u32 %v1434_v7, %v512_v23  ;;  %v1282_v51 = vpop.eup %1281 }
  0x70   : > { %v1612_v49 = vshll.u32 %v506_v19, 8  ;;  %v431_v52 = vsel %vm427_vm3, %v411_v34, %v414_v29  ;;  %v433_v53 = vsel %vm429_vm4, %v417_v30, %v432_v38  ;;  %v440_v54 = vsel %vm430_vm2, %v426_v35, 1326507024  ;;  %v1621_v59 = vpop.eup %1283 }
  0x71   : > { %v516_v55 = vshrl.u32 %v1435_v10, %v513_v36  ;;  %v438_v60 = vsel %vm428_vm5, %v435_v44, %v437_v45  ;;  %v441_v63 = vsel %vm429_vm4, %v423_v33, %v440_v54  ;;  %v1160_v0 = vadd.s32 4294967169, %v605_v41 }
  0x72   : > { %v609_v5 = vor.u32 8388608, %v1595_v37  ;;  %v334_v6 = vmul.f32 0.6931472, %v1280_v46  ;;  %1287 = vrsqrt.f32 %v1601_v42  ;;  %v442_v9 = vsel %vm428_vm5, %v439_v47, %v441_v63 }
  0x73   : > { %v511_v11 = vshrl.u32 %v1572_v2, 5  ;;  %v434_v13 = vsel %vm428_vm5, %v431_v52, %v433_v53  ;;  %v1634_v14 = vmul.u32.u64.low %v443_v40, %v442_v9  ;;  %v1635_v16 = vmul.u32.u64.high %v443_v40, %v442_v9, %v1634_v14 }
  0x74   : > { %v514_v18 = vshrl.u32 %v1434_v7, %v513_v36  ;;  %v1638_v19 = vmul.u32.u64.low %v443_v40, %v438_v60  ;;  %v1639_v20 = vmul.u32.u64.high %v443_v40, %v438_v60, %v1638_v19  ;;  %v517_v21 = vor.u32 %v516_v55, %v515_v48 }
  0x75   : > { %v518_v22 = vshll.u32 %v1435_v10, %v512_v23  ;;  %v519_v24 = vshrl.u32 %v1436_v12, %v513_v36  ;;  %v521_v25 = vshll.u32 %v1436_v12, %v512_v23  ;;  %v522_v2 = vshrl.u32 %v1437_v15, %v513_v36 }
  0x76   : > { %v524_v1 = vshll.u32 %v1437_v15, %v512_v23  ;;  %v525_v27 = vshrl.u32 %v1438_v17, %v513_v36  ;;  %v527_v28 = vshll.u32 %v1438_v17, %v512_v23  ;;  %v528_v29 = vshrl.u32 %v1439_v26, %v513_v36 }
  0x77   : > { %vm530_vm6 = vcmp.lt.s32.totalorder %v511_v11, 1  ;;  %v450_v30 = vmul.u32 %v443_v40, %v434_v13  ;;  %vm452_vm7 = vc.u32 %v1635_v16, %v1638_v19  ;;  %v520_v31 = vor.u32 %v519_v24, %v518_v22 }
  0x78   : > { %v523_v33 = vor.u32 %v522_v2, %v521_v25  ;;  %v453_v34 = vadd.s32 1, %v1639_v20  ;;  %v526_v35 = vor.u32 %v525_v27, %v524_v1  ;;  %v529_v38 = vor.u32 %v528_v29, %v527_v28 }
  0x79   : > { %vm531_vm8 = vcmp.lt.s32.totalorder %v511_v11, 2  ;;  %vm532_vm9 = vcmp.lt.s32.totalorder %v511_v11, 3  ;;  %vm533_vm10 = vcmp.lt.s32.totalorder %v511_v11, 4  ;;  %v534_v39 = vsel %vm530_vm6, %v514_v18, %v517_v21 }
  0x7a   : > { %v538_v23 = vsel %vm530_vm6, %v517_v21, %v520_v31  ;;  %v454_v36 = vsel %vm452_vm7, %v453_v34, %v1639_v20  ;;  %v535_v41 = vsel %vm533_vm10, %v523_v33, 2102212464  ;;  %v539_v40 = vsel %vm533_vm10, %v526_v35, 920167782 }
  0x7b   : > { %v542_v44 = vsel %vm530_vm6, %v520_v31, %v523_v33  ;;  %v455_v45 = vadd.s32 %v454_v36, %v450_v30  ;;  %v536_v46 = vsel %vm532_vm9, %v520_v31, %v535_v41  ;;  %v540_v47 = vsel %vm532_vm9, %v523_v33, %v539_v40 }
  0x7c   : > { %v543_v48 = vsel %vm533_vm10, %v529_v38, 1326507024  ;;  %v1286_v52 = vpop.eup %1285  ;;  %v537_v53 = vsel %vm531_vm8, %v534_v39, %v536_v46  ;;  %v541_v54 = vsel %vm531_vm8, %v538_v23, %v540_v47  ;;  %v611_v60 = vadd.s32 1, %v1160_v0 }
  0x7d   : > { %v544_v55 = vsel %vm532_vm9, %v526_v35, %v543_v48  ;;  %v456_v63 = vadd.s32 536870912, %v455_v45  ;;  %v1661_v13 = vmul.u32.u64.low %v1612_v49, %v541_v54  ;;  %v1662_v14 = vmul.u32.u64.high %v1612_v49, %v541_v54, %v1661_v13 }
  0x7e   : > { %v545_v9 = vsel %vm531_vm8, %v542_v44, %v544_v55  ;;  %v336_v18 = vmul.f32 0.6931472, %v1282_v51  ;;  %vm612_vm11 = vcmp.gt.s32.totalorder %v611_v60, 0  ;;  %v1669_v24 = vmul.f32 -2.0, %v334_v6 }
  0x7f   : > { %v1666_v20 = vmul.u32.u64.low %v1612_v49, %v545_v9  ;;  %v1667_v21 = vmul.u32.u64.high %v1612_v49, %v545_v9, %v1666_v20  ;;  %v1288_v22 = vpop.eup %1287  ;;  %v1672_v25 = vmul.f32 6.2831855, %v1560_v57  ;;  %v1674_v0 = vshrl.u32 %v456_v63, 30 }
  0x80   : > { %v613_v11 = vsel %vm612_vm11, %v611_v60, 0  ;;  %v348_v2 = vmul.f32 %v1286_v52, %v1588_v32  ;;  %v553_v1 = vmul.u32 %v1612_v49, %v537_v53  ;;  %v704_v51 = vand.u32 2147483647, %v1566_v61 }
  0x81   : > { %v615_v27 = vand.u32 31, %v613_v11  ;;  %vm349_vm12 = vcmp.eq.f32.partialorder %v1588_v32, inf  ;;  %v458_v28 = vshll.u32 %v1674_v0, 30  ;;  %v556_v6 = vadd.s32 1, %v1662_v14 }
  0x82   : > { %v1684_v57 = vshll.u32 %v609_v5, 8  ;;  %v1686_v29 = vmul.f32 -2.0, %v336_v18  ;;  %v352_v30 = vand.u32 2147483648, %v1588_v32  ;;  %vm555_vm13 = vc.u32 %v1667_v21, %v1661_v13 }
  0x83   : > { %v616_v49 = vsub.s32 32, %v615_v27  ;;  %v359_v31 = vand.u32 2147483648, %v1601_v42  ;;  %1289 = vrsqrt.f32 %v1669_v24  ;;  %v1693_v33 = vsub.s32 %v455_v45, %v458_v28 }
  0x84   : > { %v557_v34 = vsel %vm555_vm13, %v556_v6, %v1662_v14  ;;  %v350_v37 = vsel %vm349_vm12, %v1588_v32, %v348_v2  ;;  %v355_v5 = vmul.f32 %v1288_v22, %v1601_v42  ;;  %v366_v35 = vand.u32 2147483648, %v1669_v24 }
  0x85   : > { %v558_v38 = vadd.s32 %v557_v34, %v553_v1  ;;  %vm351_vm14 = vcmp.eq.f32.partialorder %v1588_v32, 0.0  ;;  %vm356_vm15 = vcmp.eq.f32.partialorder %v1601_v42, inf  ;;  %v461_v39 = vsub.s32 0, %v1693_v33 }
  0x86   : > { %v618_v23 = vshll.u32 %v1434_v7, %v615_v27  ;;  %v619_v36 = vshrl.u32 %v1435_v10, %v616_v49  ;;  %v621_v41 = vshll.u32 %v1435_v10, %v615_v27  ;;  %v622_v44 = vshrl.u32 %v1436_v12, %v616_v49 }
  0x87   : > { %v559_v40 = vadd.s32 536870912, %v558_v38  ;;  %v624_v45 = vshll.u32 %v1436_v12, %v615_v27  ;;  %v625_v46 = vshrl.u32 %v1437_v15, %v616_v49  ;;  %vm397_vm0 = vcmp.lt.s32.totalorder %v1548_v4, 0 }
  0x88   : > { %v451_v47 = vadd.s32 %v1638_v19, %v1635_v16  ;;  %v1153_v48 = vmin.u32 %v461_v39, %v1693_v33  ;;  %v614_v52 = vshrl.u32 %v613_v11, 5  ;;  %v627_v53 = vshll.u32 %v1437_v15, %v615_v27 }
  0x89   : > { %v481_v54 = vsub.s32 4, %v1674_v0  ;;  %v1714_v55 = vshrl.u32 %v559_v40, 30  ;;  %v628_v60 = vshrl.u32 %v1438_v17, %v616_v49  ;;  %v707_v63 = vand.u32 2139095040, %v1566_v61 }
  0x8a   : > { %v463_v9 = vclz %v1153_v48  ;;  %v617_v14 = vshrl.u32 %v1434_v7, %v616_v49  ;;  %v630_v18 = vshll.u32 %v1438_v17, %v615_v27  ;;  %v631_v16 = vshrl.u32 %v1439_v26, %v616_v49 }
  0x8b   : > { %v561_v19 = vshll.u32 %v1714_v55, 30  ;;  %v620_v20 = vor.u32 %v619_v36, %v618_v23  ;;  %v623_v22 = vor.u32 %v622_v44, %v621_v41  ;;  %v626_v11 = vor.u32 %v625_v46, %v624_v45 }
  0x8c   : > { %v1154_v2 = vadd.s32 4294967294, %v463_v9  ;;  %v629_v1 = vor.u32 %v628_v60, %v627_v53  ;;  %vm633_vm1 = vcmp.lt.s32.totalorder %v614_v52, 1  ;;  %vm636_vm2 = vcmp.lt.s32.totalorder %v614_v52, 4 }
  0x8d   : > { %v1722_v28 = vsub.s32 %v558_v38, %v561_v19  ;;  %vm634_vm3 = vcmp.lt.s32.totalorder %v614_v52, 2  ;;  %v638_v6 = vsel %vm636_vm2, %v626_v11, 2102212464  ;;  %v708_v34 = vshrl.u32 %v707_v63, 23 }
  0x8e   : > { %vm1155_vm4 = vcmp.lt.s32.totalorder %v1154_v2, 0  ;;  %v632_v39 = vor.u32 %v631_v16, %v630_v18  ;;  %vm635_vm5 = vcmp.lt.s32.totalorder %v614_v52, 3  ;;  %v637_v27 = vsel %vm633_vm1, %v617_v14, %v620_v20 }
  0x8f   : > { %vm1728_vm6 = vcmp.le.f32.partialorder %v395_v43, 0.7853982  ;;  %v466_v23 = vsel %vm1155_vm4, 0, %v1154_v2  ;;  %v564_v36 = vsub.s32 0, %v1722_v28  ;;  %v639_v38 = vsel %vm635_vm5, %v623_v22, %v638_v6 }
  0x90   : > { %v641_v41 = vsel %vm633_vm1, %v620_v20, %v623_v22  ;;  %v467_v40 = vsub.s32 32, %v466_v23  ;;  %v468_v44 = vshll.u32 %v1693_v33, %v466_v23  ;;  %v471_v45 = vsub.s32 4294967266, %v466_v23  ;;  %v1290_v48 = vpop.eup %1289 }
  0x91   : > { %v642_v46 = vsel %vm636_vm2, %v629_v1, 920167782  ;;  %v1739_v43 = vsel %vm351_vm14, %v352_v30, %v350_v37  ;;  %v1744_v53 = vsel %vm356_vm15, %v1601_v42, %v355_v5  ;;  %v482_v60 = vsel %vm397_vm0, %v481_v54, %v1674_v0 }
  0x92   : > { %v1157_v63 = vmin.u32 %v564_v36, %v1722_v28  ;;  %v469_v33 = vshrl.u32 %v451_v47, %v467_v40  ;;  %v472_v9 = vadd.s32 127, %v471_v45  ;;  %v643_v14 = vsel %vm635_vm5, %v626_v11, %v642_v46 }
  0x93   : > { %v645_v18 = vsel %vm633_vm1, %v623_v22, %v626_v11  ;;  %v640_v30 = vsel %vm634_vm3, %v637_v27, %v639_v38  ;;  %v644_v37 = vsel %vm634_vm3, %v641_v41, %v643_v14  ;;  %v646_v5 = vsel %vm636_vm2, %v632_v39, 1326507024 }
  0x94   : > { %v566_v32 = vclz %v1157_v63  ;;  %v470_v16 = vor.u32 %v469_v33, %v468_v44  ;;  %v473_v19 = vshll.u32 %v472_v9, 23  ;;  %v647_v20 = vsel %vm635_vm5, %v629_v1, %v646_v5 }
  0x95   : > { %v1164_v0 = vadd.s32 4294967169, %v708_v34  ;;  %vm500_vm7 = vcmp.lt.s32.totalorder %v1550_v8, 0  ;;  %v648_v54 = vsel %vm634_vm3, %v645_v18, %v647_v20  ;;  %v554_v1 = vadd.s32 %v1661_v13, %v1667_v21 }
  0x96   : > { %v1158_v47 = vadd.s32 4294967294, %v566_v32  ;;  %v1759_v2 = vmul.u32.u64.low %v1684_v57, %v644_v37  ;;  %v1760_v22 = vmul.u32.u64.high %v1684_v57, %v644_v37, %v1759_v2  ;;  %v474_v11 = vor.u32 4788187, %v473_v19 }
  0x97   : > { %v477_v6 = vcvt.s32.f32 %v470_v16  ;;  %v1764_v27 = vmul.u32.u64.low %v1684_v57, %v648_v54  ;;  %v1765_v39 = vmul.u32.u64.high %v1684_v57, %v648_v54, %v1764_v27  ;;  %v711_v34 = vand.u32 8388607, %v704_v51 }
  0x98   : > { %vm1159_vm8 = vcmp.lt.s32.totalorder %v1158_v47, 0  ;;  %v714_v52 = vadd.s32 1, %v1164_v0  ;;  %v475_v23 = vand.u32 2147483647, %v474_v11  ;;  %v484_v36 = vsel %vm1728_vm6, 0, %v482_v60 }
  0x99   : > { %v569_v38 = vsel %vm1159_vm8, 0, %v1158_v47  ;;  %v656_v41 = vmul.u32 %v1684_v57, %v640_v30  ;;  %v659_v46 = vadd.s32 1, %v1760_v22  ;;  %v584_v13 = vsub.s32 4, %v1714_v55 }
  0x9a   : > { %v570_v40 = vsub.s32 32, %v569_v38  ;;  %v571_v44 = vshll.u32 %v1722_v28, %v569_v38  ;;  %v574_v45 = vsub.s32 4294967266, %v569_v38  ;;  %v478_v63 = vmul.f32 %v477_v6, %v475_v23 }
  0x9b   : > { %vm658_vm9 = vc.u32 %v1765_v39, %v1759_v2  ;;  %vm715_vm10 = vcmp.gt.s32.totalorder %v714_v52, 0  ;;  %vm1781_vm11 = vcmp.le.f32.partialorder %v498_v50, 0.7853982  ;;  %v1787_v9 = vmul.f32 %v1290_v48, %v1669_v24 }
  0x9c   : > { %v572_v57 = vshrl.u32 %v554_v1, %v570_v40  ;;  %v575_v60 = vadd.s32 127, %v574_v45  ;;  %v660_v28 = vsel %vm658_vm9, %v659_v46, %v1760_v22  ;;  %v716_v33 = vsel %vm715_vm10, %v714_v52, 0 }
  0x9d   : > { %v479_v14 = vxor.u32 2147483648, %v478_v63  ;;  %v661_v18 = vadd.s32 %v660_v28, %v656_v41  ;;  %v718_v32 = vand.u32 31, %v716_v33  ;;  %v1789_v30 = vand.u32 3, %v484_v36 }
  0x9e   : > { %v573_v37 = vor.u32 %v572_v57, %v571_v44  ;;  %v576_v5 = vshll.u32 %v575_v60, 23  ;;  %v807_v50 = vand.u32 2147483647, %v1568_v62  ;;  %v1797_v19 = vsel %vm500_vm7, %v584_v13, %v1714_v55 }
  0x9f   : > { %v480_v16 = vsel %vm397_vm0, %v479_v14, %v478_v63  ;;  %v662_v20 = vadd.s32 536870912, %v661_v18  ;;  %v719_v48 = vsub.s32 32, %v718_v32  ;;  %v712_v22 = vor.u32 8388608, %v711_v34 }
  0xa0   : > { %v483_v0 = vsel %vm1728_vm6, %v1548_v4, %v480_v16  ;;  %v577_v47 = vor.u32 4788187, %v576_v5  ;;  %v580_v54 = vcvt.s32.f32 %v573_v37  ;;  %v721_v6 = vshll.u32 %v1434_v7, %v718_v32 }
  0xa1   : > { %1291 = vcosq.f32 %v483_v0  ;;  %v1802_v11 = vshrl.u32 %v662_v20, 30  ;;  %v810_v27 = vand.u32 2139095040, %v1568_v62  ;;  %v722_v55 = vshrl.u32 %v1435_v10, %v719_v48 }
  0xa2   : > { %1293 = vsinq.f32 %v483_v0  ;;  %v578_v1 = vand.u32 2147483647, %v577_v47  ;;  %v724_v52 = vshll.u32 %v1435_v10, %v718_v32  ;;  %v725_v49 = vshrl.u32 %v1436_v12, %v719_v48 }
  0xa3   : > { %v664_v23 = vshll.u32 %v1802_v11, 30  ;;  %v727_v36 = vshll.u32 %v1436_v12, %v718_v32  ;;  %v728_v34 = vshrl.u32 %v1437_v15, %v719_v48  ;;  %v717_v41 = vshrl.u32 %v716_v33, 5 }
  0xa4   : > { %v581_v38 = vmul.f32 %v580_v54, %v578_v1  ;;  %v730_v40 = vshll.u32 %v1437_v15, %v718_v32  ;;  %v731_v44 = vshrl.u32 %v1438_v17, %v719_v48  ;;  %v587_v45 = vsel %vm1781_vm11, 0, %v1797_v19 }
  0xa5   : > { %v1817_v46 = vsub.s32 %v661_v18, %v664_v23  ;;  %v733_v63 = vshll.u32 %v1438_v17, %v718_v32  ;;  %v1820_v13 = vshll.u32 %v712_v22, 8  ;;  %v720_v60 = vshrl.u32 %v1434_v7, %v719_v48 }
  0xa6   : > { %v582_v57 = vxor.u32 2147483648, %v581_v38  ;;  %v734_v28 = vshrl.u32 %v1439_v26, %v719_v48  ;;  %v811_v33 = vshrl.u32 %v810_v27, 23  ;;  %v723_v37 = vor.u32 %v722_v55, %v721_v6 }
  0xa7   : > { %v667_v14 = vsub.s32 0, %v1817_v46  ;;  %v726_v5 = vor.u32 %v725_v49, %v724_v52  ;;  %v729_v16 = vor.u32 %v728_v34, %v727_v36  ;;  %vm493_vm12 = vcmp.eq.s32.totalorder %v1789_v30, 2 }
  0xa8   : > { %v583_v18 = vsel %vm500_vm7, %v582_v57, %v581_v38  ;;  %v732_v19 = vor.u32 %v731_v44, %v730_v40  ;;  %v735_v32 = vor.u32 %v734_v28, %v733_v63  ;;  %vm736_vm13 = vcmp.lt.s32.totalorder %v717_v41, 1 }
  0xa9   : > { %v586_v20 = vsel %vm1781_vm11, %v1550_v8, %v583_v18  ;;  %vm603_vm14 = vcmp.lt.s32.totalorder %v1562_v58, 0  ;;  %v1161_v48 = vmin.u32 %v667_v14, %v1817_v46  ;;  %vm737_vm15 = vcmp.lt.s32.totalorder %v717_v41, 2 }
  0xaa   : > { %vm739_vm0 = vcmp.lt.s32.totalorder %v717_v41, 4  ;;  %vm358_vm1 = vcmp.eq.f32.partialorder %v1601_v42, 0.0  ;;  %1295 = vcosq.f32 %v586_v20  ;;  %vm738_vm2 = vcmp.lt.s32.totalorder %v717_v41, 3 }
  0xab   : > { %v740_v0 = vsel %vm736_vm13, %v720_v60, %v723_v37  ;;  %v741_v47 = vsel %vm739_vm0, %v729_v16, 2102212464  ;;  %1297 = vsinq.f32 %v586_v20  ;;  %v669_v54 = vclz %v1161_v48 }
  0xac   : > { %v742_v22 = vsel %vm738_vm2, %v726_v5, %v741_v47  ;;  %v744_v6 = vsel %vm736_vm13, %v723_v37, %v726_v5  ;;  %v657_v21 = vadd.s32 %v1759_v2, %v1765_v39  ;;  %v745_v27 = vsel %vm739_vm0, %v732_v19, 920167782 }
  0xad   : > { %v748_v1 = vsel %vm736_vm13, %v726_v5, %v729_v16  ;;  %v749_v55 = vsel %vm739_vm0, %v735_v32, 1326507024  ;;  %vm1841_vm3 = vcmp.le.f32.partialorder %v601_v3, 0.7853982  ;;  %v1162_v23 = vadd.s32 4294967294, %v669_v54 }
  0xae   : > { %v687_v49 = vsub.s32 4, %v1802_v11  ;;  %v746_v36 = vsel %vm738_vm2, %v729_v16, %v745_v27  ;;  %v750_v34 = vsel %vm738_vm2, %v732_v19, %v749_v55  ;;  %v1292_v38 = vpop.eup %1291  ;;  %v743_v40 = vsel %vm737_vm15, %v740_v0, %v742_v22 }
  0xaf   : > { %v747_v2 = vsel %vm737_vm15, %v744_v6, %v746_v36  ;;  %v751_v39 = vsel %vm737_vm15, %v748_v1, %v750_v34  ;;  %v1168_v44 = vadd.s32 4294967169, %v811_v33  ;;  %v1294_v63 = vpop.eup %1293  ;;  %vm487_vm4 = vweird.f32 %v1548_v4 }
  0xb0   : > { %v494_v3 = vxor.u32 2147483648, %v1292_v38  ;;  %vm1163_vm5 = vcmp.lt.s32.totalorder %v1162_v23, 0  ;;  %v1851_v57 = vmul.u32.u64.low %v1820_v13, %v751_v39  ;;  %v1852_v60 = vmul.u32.u64.high %v1820_v13, %v751_v39, %v1851_v57 }
  0xb1   : > { %v491_v28 = vxor.u32 2147483648, %v1294_v63  ;;  %v672_v14 = vsel %vm1163_vm5, 0, %v1162_v23  ;;  %v1855_v37 = vmul.u32.u64.low %v1820_v13, %v747_v2  ;;  %v1856_v5 = vmul.u32.u64.high %v1820_v13, %v747_v2, %v1855_v37 }
  0xb2   : > { %vm490_vm6 = vcmp.eq.s32.totalorder %v1789_v30, 0  ;;  %v673_v41 = vsub.s32 32, %v672_v14  ;;  %v674_v33 = vshll.u32 %v1817_v46, %v672_v14  ;;  %v677_v16 = vsub.s32 4294967266, %v672_v14 }
  0xb3   : > { %vm489_vm7 = vcmp.lt.s32.totalorder %v1789_v30, 2  ;;  %v1862_v18 = vand.u32 3, %v587_v45  ;;  %v688_v19 = vsel %vm603_vm14, %v687_v49, %v1802_v11  ;;  %v817_v32 = vadd.s32 1, %v1168_v44 }
  0xb4   : > { %v495_v20 = vsel %vm493_vm12, %v494_v3, %v1294_v63  ;;  %v675_v48 = vshrl.u32 %v657_v21, %v673_v41  ;;  %v678_v0 = vadd.s32 127, %v677_v16  ;;  %v759_v47 = vmul.u32 %v1820_v13, %v743_v40 }
  0xb5   : > { %v492_v54 = vsel %vm490_vm6, %v1292_v38, %v491_v28  ;;  %vm761_vm8 = vc.u32 %v1852_v60, %v1855_v37  ;;  %v762_v46 = vadd.s32 1, %v1856_v5  ;;  %vm818_vm9 = vcmp.gt.s32.totalorder %v817_v32, 0 }
  0xb6   : > { %v1878_v11 = vsel %vm358_vm1, %v359_v31, %v1744_v53  ;;  %v676_v45 = vor.u32 %v675_v48, %v674_v33  ;;  %v679_v22 = vshll.u32 %v678_v0, 23  ;;  %v819_v6 = vsel %vm818_vm9, %v817_v32, 0 }
  0xb7   : > { %v690_v13 = vsel %vm1841_vm3, 0, %v688_v19  ;;  %v763_v21 = vsel %vm761_vm8, %v762_v46, %v1856_v5  ;;  %v814_v27 = vand.u32 8388607, %v807_v50  ;;  %v821_v1 = vand.u32 31, %v819_v6  ;;  %v1296_v55 = vpop.eup %1295 }
  0xb8   : > { %v496_v23 = vsel %vm489_vm7, %v492_v54, %v495_v20  ;;  %v680_v49 = vor.u32 4788187, %v679_v22  ;;  %v683_v42 = vcvt.s32.f32 %v676_v45  ;;  %v764_v31 = vadd.s32 %v763_v21, %v759_v47  ;;  %v1298_v53 = vpop.eup %1297 }
  0xb9   : > { %vm592_vm10 = vcmp.lt.s32.totalorder %v1862_v18, 2  ;;  %vm593_vm11 = vcmp.eq.s32.totalorder %v1862_v18, 0  ;;  %vm596_vm12 = vcmp.eq.s32.totalorder %v1862_v18, 2  ;;  %v822_v36 = vsub.s32 32, %v821_v1 }
  0xba   : > { %v597_v34 = vxor.u32 2147483648, %v1296_v55  ;;  %v681_v38 = vand.u32 2147483647, %v680_v49  ;;  %v1890_v40 = vand.u32 3, %v690_v13  ;;  %v765_v2 = vadd.s32 536870912, %v764_v31 }
  0xbb   : > { %v1894_v30 = vsel %vm487_vm4, nan, %v496_v23  ;;  %v815_v39 = vor.u32 8388608, %v814_v27  ;;  %v824_v44 = vshll.u32 %v1434_v7, %v821_v1  ;;  %v827_v63 = vshll.u32 %v1435_v10, %v821_v1 }
  0xbc   : > { %vm590_vm13 = vweird.f32 %v1550_v8  ;;  %v594_v3 = vxor.u32 2147483648, %v1298_v53  ;;  %v684_v57 = vmul.f32 %v683_v42, %v681_v38  ;;  %v1899_v28 = vshrl.u32 %v765_v2, 30 }
  0xbd   : > { %v825_v14 = vshrl.u32 %v1435_v10, %v822_v36  ;;  %v828_v5 = vshrl.u32 %v1436_v12, %v822_v36  ;;  %v830_v41 = vshll.u32 %v1436_v12, %v821_v1  ;;  %v831_v4 = vshrl.u32 %v1437_v15, %v822_v36 }
  0xbe   : > { %v833_v33 = vshll.u32 %v1437_v15, %v821_v1  ;;  %vm363_vm15 = vcmp.eq.f32.partialorder %v1669_v24, inf  ;;  %v598_v16 = vsel %vm596_vm12, %v597_v34, %v1298_v53  ;;  %v685_v19 = vxor.u32 2147483648, %v684_v57 }
  0xbf   : > { %v767_v32 = vshll.u32 %v1899_v28, 30  ;;  %v820_v20 = vshrl.u32 %v819_v6, 5  ;;  %v823_v48 = vshrl.u32 %v1434_v7, %v822_v36  ;;  %v834_v0 = vshrl.u32 %v1438_v17, %v822_v36 }
  0xc0   : > { %v836_v47 = vshll.u32 %v1438_v17, %v821_v1  ;;  %v837_v54 = vshrl.u32 %v1439_v26, %v822_v36  ;;  %v595_v46 = vsel %vm593_vm11, %v1296_v55, %v594_v3  ;;  %v686_v45 = vsel %vm603_vm14, %v685_v19, %v684_v57 }
  0xc1   : > { %v1918_v22 = vsub.s32 %v764_v31, %v767_v32  ;;  %v826_v13 = vor.u32 %v825_v14, %v824_v44  ;;  %v689_v6 = vsel %vm1841_vm3, %v1562_v58, %v686_v45  ;;  %v829_v21 = vor.u32 %v828_v5, %v827_v63 }
  0xc2   : > { %v832_v27 = vor.u32 %v831_v4, %v830_v41  ;;  %v835_v23 = vor.u32 %v834_v0, %v833_v33  ;;  %1299 = vcosq.f32 %v689_v6  ;;  %v838_v49 = vor.u32 %v837_v54, %v836_v47 }
  0xc3   : > { %v770_v1 = vsub.s32 0, %v1918_v22  ;;  %vm839_vm0 = vcmp.lt.s32.totalorder %v820_v20, 1  ;;  %1301 = vsinq.f32 %v689_v6  ;;  %vm841_vm1 = vcmp.lt.s32.totalorder %v820_v20, 3 }
  0xc4   : > { %vm842_vm2 = vcmp.lt.s32.totalorder %v820_v20, 4  ;;  %v855_v55 = vshll.u32 %v815_v39, 8  ;;  %v599_v42 = vsel %vm592_vm10, %v595_v46, %v598_v16  ;;  %vm840_vm14 = vcmp.lt.s32.totalorder %v820_v20, 2 }
  0xc5   : > { %v1165_v31 = vmin.u32 %v770_v1, %v1918_v22  ;;  %v843_v52 = vsel %vm839_vm0, %v823_v48, %v826_v13  ;;  %v844_v53 = vsel %vm842_vm2, %v832_v27, 2102212464  ;;  %v847_v36 = vsel %vm839_vm0, %v826_v13, %v829_v21 }
  0xc6   : > { %v848_v34 = vsel %vm842_vm2, %v835_v23, 920167782  ;;  %v851_v38 = vsel %vm839_vm0, %v829_v21, %v832_v27  ;;  %v845_v44 = vsel %vm841_vm1, %v829_v21, %v844_v53  ;;  %v852_v3 = vsel %vm842_vm2, %v838_v49, 1326507024 }
  0xc7   : > { %v772_v2 = vclz %v1165_v31  ;;  %v849_v63 = vsel %vm841_vm1, %v832_v27, %v848_v34  ;;  %v600_v39 = vsel %vm590_vm13, nan, %v599_v42  ;;  %v846_v57 = vsel %vm840_vm14, %v843_v52, %v845_v44 }
  0xc8   : > { %v850_v18 = vsel %vm840_vm14, %v847_v36, %v849_v63  ;;  %v853_v14 = vsel %vm841_vm1, %v835_v23, %v852_v3  ;;  %v364_v16 = vsel %vm363_vm15, %v1669_v24, %v1787_v9  ;;  %vm706_vm3 = vcmp.lt.s32.totalorder %v1566_v61, 0 }
  0xc9   : > { %v1166_v5 = vadd.s32 4294967294, %v772_v2  ;;  %v854_v41 = vsel %vm840_vm14, %v851_v38, %v853_v14  ;;  %v1932_v4 = vmul.u32.u64.low %v855_v55, %v850_v18  ;;  %v1933_v33 = vmul.u32.u64.high %v855_v55, %v850_v18, %v1932_v4 }
  0xca   : > { %v1941_v19 = vmul.u32.u64.low %v855_v55, %v854_v41  ;;  %v1942_v8 = vmul.u32.u64.high %v855_v55, %v854_v41, %v1941_v19  ;;  %v913_v32 = vand.u32 2139095040, %v1672_v25  ;;  %vm365_vm4 = vcmp.eq.f32.partialorder %v1669_v24, 0.0 }
  0xcb   : > { %vm696_vm5 = vcmp.eq.s32.totalorder %v1890_v40, 0  ;;  %v760_v20 = vadd.s32 %v1855_v37, %v1852_v60  ;;  %vm1167_vm6 = vcmp.lt.s32.totalorder %v1166_v5, 0  ;;  %v1013_v48 = vmul.f32 %v1894_v30, %v1739_v43  ;;  %v1019_v37 = vld [vmem:[%s1541_s17] sm:$0xff] }
  0xcc   : > { %vm695_vm7 = vcmp.lt.s32.totalorder %v1890_v40, 2  ;;  %v775_v9 = vsel %vm1167_vm6, 0, %v1166_v5  ;;  %v862_v0 = vmul.u32 %v855_v55, %v846_v57  ;;  %v914_v47 = vshrl.u32 %v913_v32, 23 }
  0xcd   : > { %v1014_v54 = vmul.f32 %v600_v39, %v1878_v11  ;;  %v776_v46 = vsub.s32 32, %v775_v9  ;;  %v777_v45 = vshll.u32 %v1918_v22, %v775_v9  ;;  %v780_v13 = vsub.s32 4294967266, %v775_v9  ;;  %v1020_v11 = vld [vmem:[%s1541_s17 + $0x8] sm:$0xff] }
  0xce   : > { %v865_v6 = vadd.s32 1, %v1933_v33  ;;  %vm699_vm8 = vcmp.eq.s32.totalorder %v1890_v40, 2  ;;  %v790_v60 = vsub.s32 4, %v1899_v28  ;;  %vm864_vm9 = vc.u32 %v1942_v8, %v1932_v4 }
  0xcf   : > { %v1172_v43 = vadd.s32 4294967169, %v914_v47  ;;  %v778_v30 = vshrl.u32 %v760_v20, %v776_v46  ;;  %v781_v21 = vadd.s32 127, %v780_v13  ;;  %v1025_v23 = vmul.f32 0.1, %v1013_v48  ;;  %v1300_v1 = vpop.eup %1299 }
  0xd0   : > { %v866_v27 = vsel %vm864_vm9, %v865_v6, %v1933_v33  ;;  %vm693_vm10 = vweird.f32 %v1562_v58  ;;  %v910_v49 = vand.u32 2147483647, %v1672_v25  ;;  %v1026_v42 = vmul.f32 0.1, %v1014_v54  ;;  %v1302_v31 = vpop.eup %1301 }
  0xd1   : > { %v867_v22 = vadd.s32 %v866_v27, %v862_v0  ;;  %v920_v55 = vadd.s32 1, %v1172_v43  ;;  %v700_v52 = vxor.u32 2147483648, %v1300_v1  ;;  %v779_v53 = vor.u32 %v778_v30, %v777_v45 }
  0xd2   : > { %v782_v36 = vshll.u32 %v781_v21, 23  ;;  %v1031_v34 = vadd.f32 %v1025_v23, %v1019_v37  ;;  %v697_v38 = vxor.u32 2147483648, %v1302_v31  ;;  %v1032_v44 = vadd.f32 %v1026_v42, %v1020_v11 }
  0xd3   : > { %v868_v2 = vadd.s32 536870912, %v867_v22  ;;  %vm921_vm11 = vcmp.gt.s32.totalorder %v920_v55, 0  ;;  %v786_v3 = vcvt.s32.f32 %v779_v53  ;;  %v1967_v39 = vsel %vm706_vm3, %v790_v60, %v1899_v28 }
  0xd4   : > { %v783_v63 = vor.u32 4788187, %v782_v36  ;;  %v922_v57 = vsel %vm921_vm11, %v920_v55, 0  ;;  %1037 = vst [vmem:[%s1971_s18] sm:$0xff] %v1031_v34  ;;  %v698_v18 = vsel %vm696_vm5, %v1300_v1, %v697_v38  ;;  %v701_v14 = vsel %vm699_vm8, %v700_v52, %v1302_v31  ;;  %1038 = vst [vmem:[%s1971_s18 + $0x8] sm:$0xff] %v1032_v44 }
  0xd5   : > { %v1978_v5 = vshrl.u32 %v868_v2, 30  ;;  %v924_v41 = vand.u32 31, %v922_v57  ;;  %v1982_v28 = vmul.f32 0.6931472, %v1621_v59  ;;  %1303 = vrsqrt.f32 %v1686_v29 }
  0xd6   : > { %vm1987_vm12 = vcmp.le.f32.partialorder %v704_v51, 0.7853982  ;;  %v784_v19 = vand.u32 2147483647, %v783_v63  ;;  %v367_v32 = vsel %vm365_vm4, %v366_v35, %v364_v16  ;;  %v917_v59 = vand.u32 8388607, %v910_v49 }
  0xd7   : > { %v870_v20 = vshll.u32 %v1978_v5, 30  ;;  %v925_v48 = vsub.s32 32, %v924_v41  ;;  %v702_v9 = vsel %vm695_vm7, %v698_v18, %v701_v14  ;;  %v793_v51 = vsel %vm1987_vm12, 0, %v1967_v39 }
  0xd8   : > { %v787_v0 = vmul.f32 %v786_v3, %v784_v19  ;;  %v863_v47 = vadd.s32 %v1932_v4, %v1942_v8  ;;  %v927_v24 = vshll.u32 %v1434_v7, %v924_v41  ;;  %v930_v16 = vshll.u32 %v1435_v10, %v924_v41 }
  0xd9   : > { %v2005_v54 = vsub.s32 %v867_v22, %v870_v20  ;;  %v928_v35 = vshrl.u32 %v1435_v10, %v925_v48  ;;  %v931_v40 = vshrl.u32 %v1436_v12, %v925_v48  ;;  %v933_v45 = vshll.u32 %v1436_v12, %v924_v41 }
  0xda   : > { %v788_v46 = vxor.u32 2147483648, %v787_v0  ;;  %v934_v13 = vshrl.u32 %v1437_v15, %v925_v48  ;;  %v918_v60 = vor.u32 8388608, %v917_v59  ;;  %v923_v43 = vshrl.u32 %v922_v57, 5 }
  0xdb   : > { %v873_v6 = vsub.s32 0, %v2005_v54  ;;  %v936_v4 = vshll.u32 %v1437_v15, %v924_v41  ;;  %v703_v8 = vsel %vm693_vm10, nan, %v702_v9  ;;  %v926_v10 = vshrl.u32 %v1434_v7, %v925_v48 }
  0xdc   : > { %v789_v37 = vsel %vm706_vm3, %v788_v46, %v787_v0  ;;  %v937_v30 = vshrl.u32 %v1438_v17, %v925_v48  ;;  %v929_v27 = vor.u32 %v928_v35, %v927_v24  ;;  %v932_v11 = vor.u32 %v931_v40, %v930_v16 }
  0xdd   : > { %v792_v12 = vsel %vm1987_vm12, %v1566_v61, %v789_v37  ;;  %v1169_v21 = vmin.u32 %v873_v6, %v2005_v54  ;;  %v935_v15 = vor.u32 %v934_v13, %v933_v45  ;;  %v939_v58 = vshll.u32 %v1438_v17, %v924_v41 }
  0xde   : > { %1305 = vcosq.f32 %v792_v12  ;;  %v938_v23 = vor.u32 %v937_v30, %v936_v4  ;;  %v940_v22 = vshrl.u32 %v1439_v26, %v925_v48  ;;  %vm942_vm13 = vcmp.lt.s32.totalorder %v923_v43, 1 }
  0xdf   : > { %1307 = vsinq.f32 %v792_v12  ;;  %v875_v1 = vclz %v1169_v21  ;;  %vm943_vm15 = vcmp.lt.s32.totalorder %v923_v43, 2  ;;  %vm944_vm0 = vcmp.lt.s32.totalorder %v923_v43, 3 }
  0xe0   : > { %vm945_vm1 = vcmp.lt.s32.totalorder %v923_v43, 4  ;;  %v946_v7 = vsel %vm942_vm13, %v926_v10, %v929_v27  ;;  %v941_v42 = vor.u32 %v940_v22, %v939_v58  ;;  %v950_v52 = vsel %vm942_vm13, %v929_v27, %v932_v11 }
  0xe1   : > { %v1170_v55 = vadd.s32 4294967294, %v875_v1  ;;  %v947_v31 = vsel %vm945_vm1, %v935_v15, 2102212464  ;;  %v951_v36 = vsel %vm945_vm1, %v938_v23, 920167782  ;;  %v954_v34 = vsel %vm942_vm13, %v932_v11, %v935_v15 }
  0xe2   : > { %v948_v53 = vsel %vm944_vm0, %v932_v11, %v947_v31  ;;  %v958_v38 = vshll.u32 %v918_v60, 8  ;;  %v1304_v17 = vpop.eup %1303  ;;  %v952_v2 = vsel %vm944_vm0, %v935_v15, %v951_v36  ;;  %v955_v26 = vsel %vm945_vm1, %v941_v42, 1326507024  ;;  %v1022_v31 = vld [vmem:[%s1541_s17 + $0x18] sm:$0xff] }
  0xe3   : > { %vm1171_vm2 = vcmp.lt.s32.totalorder %v1170_v55, 0  ;;  %v1015_v44 = vmul.f32 %v703_v8, %v367_v32  ;;  %v949_v3 = vsel %vm943_vm15, %v946_v7, %v948_v53  ;;  %v953_v39 = vsel %vm943_vm15, %v950_v52, %v952_v2  ;;  %v1021_v32 = vld [vmem:[%s1541_s17 + $0x10] sm:$0xff] }
  0xe4   : > { %v878_v63 = vsel %vm1171_vm2, 0, %v1170_v55  ;;  %v956_v57 = vsel %vm944_vm0, %v938_v23, %v955_v26  ;;  %v2037_v59 = vmul.u32.u64.low %v958_v38, %v953_v39  ;;  %v2038_v48 = vmul.u32.u64.high %v958_v38, %v953_v39, %v2037_v59 }
  0xe5   : > { %v879_v18 = vsub.s32 32, %v878_v63  ;;  %v880_v14 = vshll.u32 %v2005_v54, %v878_v63  ;;  %v883_v41 = vsub.s32 4294967266, %v878_v63  ;;  %v957_v33 = vsel %vm943_vm15, %v954_v34, %v956_v57 }
  0xe6   : > { %v2034_v19 = vmul.u32.u64.low %v958_v38, %v957_v33  ;;  %v2035_v20 = vmul.u32.u64.high %v958_v38, %v957_v33, %v2034_v19  ;;  %v797_v9 = vand.u32 3, %v793_v51  ;;  %v1027_v35 = vmul.f32 0.1, %v1015_v44 }
  0xe7   : > { %v881_v0 = vshrl.u32 %v863_v47, %v879_v18  ;;  %v884_v24 = vadd.s32 127, %v883_v41  ;;  %v304_v16 = vmul.f32 5.9604645e-08, %v1558_v56  ;;  %v369_v54 = vmul.f32 %v1304_v17, %v1686_v29 }
  0xe8   : > { %vm370_vm14 = vcmp.eq.f32.partialorder %v1686_v29, inf  ;;  %v965_v45 = vmul.u32 %v958_v38, %v949_v3  ;;  %v1033_v13 = vadd.f32 %v1027_v35, %v1021_v32  ;;  %v2046_v6 = vmul.f32 -2.0, %v1982_v28 }
  0xe9   : > { %v882_v46 = vor.u32 %v881_v0, %v880_v14  ;;  %v885_v40 = vshll.u32 %v884_v24, 23  ;;  %vm372_vm3 = vcmp.eq.f32.partialorder %v1686_v29, 0.0  ;;  %vm967_vm4 = vc.u32 %v2035_v20, %v2037_v59 }
  0xea   : > { %v968_v51 = vadd.s32 1, %v2038_v48  ;;  %v373_v47 = vand.u32 2147483648, %v1686_v29  ;;  %vm802_vm5 = vcmp.eq.s32.totalorder %v797_v9, 2  ;;  %1039 = vst [vmem:[%s1971_s18 + $0x10] sm:$0xff] %v1033_v13  ;;  %v371_v28 = vsel %vm370_vm14, %v1686_v29, %v369_v54 }
  0xeb   : > { %v1306_v56 = vpop.eup %1305  ;;  %v886_v60 = vor.u32 4788187, %v885_v40  ;;  %v889_v43 = vcvt.s32.f32 %v882_v46  ;;  %vm799_vm6 = vcmp.eq.s32.totalorder %v797_v9, 0  ;;  %vm798_vm7 = vcmp.lt.s32.totalorder %v797_v9, 2 }
  0xec   : > { %v1308_v4 = vpop.eup %1307  ;;  %v803_v8 = vxor.u32 2147483648, %v1306_v56  ;;  %v969_v37 = vsel %vm967_vm4, %v968_v51, %v2038_v48  ;;  %1309 = vrsqrt.f32 %v2046_v6  ;;  %vm796_vm8 = vweird.f32 %v1566_v61 }
  0xed   : > { %v800_v10 = vxor.u32 2147483648, %v1308_v4  ;;  %v887_v30 = vand.u32 2147483647, %v886_v60  ;;  %v970_v12 = vadd.s32 %v969_v37, %v965_v45  ;;  %v374_v27 = vsel %vm372_vm3, %v373_v47, %v371_v28  ;;  %v1023_v28 = vld [vmem:[%s1541_s17 + $0x20] sm:$0xff] }
  0xee   : > { %v804_v21 = vsel %vm802_vm5, %v803_v8, %v1308_v4  ;;  %1311 = vlog2.f32 %v304_v16  ;;  %vm809_vm9 = vcmp.lt.s32.totalorder %v1568_v62, 0  ;;  %vm2065_vm10 = vcmp.le.f32.partialorder %v807_v50, 0.7853982 }
  0xef   : > { %v801_v11 = vsel %vm799_vm6, %v1306_v56, %v800_v10  ;;  %v890_v15 = vmul.f32 %v889_v43, %v887_v30  ;;  %v971_v23 = vadd.s32 536870912, %v970_v12  ;;  %v893_v52 = vsub.s32 4, %v1978_v5 }
  0xf0   : > { %v805_v58 = vsel %vm798_vm7, %v801_v11, %v804_v21  ;;  %vm377_vm11 = vcmp.eq.f32.partialorder %v2046_v6, inf  ;;  %v966_v14 = vadd.s32 %v2037_v59, %v2035_v20  ;;  %vm379_vm13 = vcmp.eq.f32.partialorder %v2046_v6, 0.0 }
  0xf1   : > { %v806_v1 = vsel %vm796_vm8, nan, %v805_v58  ;;  %v891_v61 = vxor.u32 2147483648, %v890_v15  ;;  %v2069_v7 = vshrl.u32 %v971_v23, 30  ;;  %v894_v17 = vsel %vm809_vm9, %v893_v52, %v1978_v5 }
  0xf2   : > { %v1016_v29 = vmul.f32 %v806_v1, %v374_v27  ;;  %v896_v44 = vsel %vm2065_vm10, 0, %v894_v17  ;;  %v380_v0 = vand.u32 2147483648, %v2046_v6  ;;  %vm899_vm2 = vweird.f32 %v1568_v62 }
  0xf3   : > { %v892_v55 = vsel %vm809_vm9, %v891_v61, %v890_v15  ;;  %v973_v42 = vshll.u32 %v2069_v7, 30  ;;  %v900_v18 = vand.u32 3, %v896_v44  ;;  %vm912_vm14 = vcmp.lt.s32.totalorder %v1672_v25, 0 }
  0xf4   : > { %v895_v50 = vsel %vm2065_vm10, %v1568_v62, %v892_v55  ;;  %v1028_v53 = vmul.f32 0.1, %v1016_v29  ;;  %vm911_vm3 = vcmp.le.f32.partialorder %v910_v49, 0.7853982  ;;  %vm1002_vm9 = vweird.f32 %v1672_v25 }
  0xf5   : > { %1313 = vcosq.f32 %v895_v50  ;;  %v974_v36 = vsub.s32 %v970_v12, %v973_v42  ;;  %vm905_vm15 = vcmp.eq.s32.totalorder %v900_v18, 2  ;;  %vm902_vm0 = vcmp.eq.s32.totalorder %v900_v18, 0 }
  0xf6   : > { %1315 = vsinq.f32 %v895_v50  ;;  %v1034_v34 = vadd.f32 %v1028_v53, %v1022_v31  ;;  %vm901_vm1 = vcmp.lt.s32.totalorder %v900_v18, 2  ;;  %v996_v12 = vsub.s32 4, %v2069_v7 }
  0xf7   : > { %v976_v38 = vsub.s32 0, %v974_v36 }
  0xf8   : > { %1040 = vst [vmem:[%s1971_s18 + $0x18] sm:$0xff] %v1034_v34  ;;  %v997_v27 = vsel %vm912_vm14, %v996_v12, %v2069_v7 }
  0xf9   : > { %v1173_v2 = vmin.u32 %v976_v38, %v974_v36  ;;  %v1310_v26 = vpop.eup %1309  ;;  %v999_v11 = vsel %vm911_vm3, 0, %v997_v27 }
  0xfa   : > { %v376_v57 = vmul.f32 %v1310_v26, %v2046_v6  ;;  %v1003_v23 = vand.u32 3, %v999_v11 }
  0xfb   : > { %v978_v63 = vclz %v1173_v2  ;;  %v1312_v3 = vpop.eup %1311 }
  0xfc   : > { %v340_v5 = vmul.f32 0.6931472, %v1312_v3  ;;  %v378_v9 = vsel %vm377_vm11, %v2046_v6, %v376_v57  ;;  %vm1008_vm5 = vcmp.eq.s32.totalorder %v1003_v23, 2  ;;  %vm1005_vm7 = vcmp.eq.s32.totalorder %v1003_v23, 0 }
  0xfd   : > { %v1174_v39 = vadd.s32 4294967294, %v978_v63  ;;  %v381_v45 = vsel %vm379_vm13, %v380_v0, %v378_v9  ;;  %vm1004_vm8 = vcmp.lt.s32.totalorder %v1003_v23, 2 }
  0xfe   : > { %v346_v51 = vmul.f32 -2.0, %v340_v5 }
  0xff   : > { %vm1175_vm12 = vcmp.lt.s32.totalorder %v1174_v39, 0 }
 0x100   : > { %v981_v41 = vsel %vm1175_vm12, 0, %v1174_v39  ;;  %1317 = vrsqrt.f32 %v346_v51  ;;  %vm384_vm4 = vcmp.eq.f32.partialorder %v346_v51, inf  ;;  %v387_v22 = vand.u32 2147483648, %v346_v51 }
 0x101   : > { %v982_v33 = vsub.s32 32, %v981_v41  ;;  %v983_v19 = vshll.u32 %v974_v36, %v981_v41  ;;  %v986_v48 = vsub.s32 4294967266, %v981_v41  ;;  %vm386_vm6 = vcmp.eq.f32.partialorder %v346_v51, 0.0  ;;  %v1024_v36 = vld [vmem:[%s1541_s17 + $0x28] sm:$0xff] }
 0x102   : > { %v1314_v32 = vpop.eup %1313 }
 0x103   : > { %v1316_v24 = vpop.eup %1315  ;;  %v906_v35 = vxor.u32 2147483648, %v1314_v32  ;;  %v984_v16 = vshrl.u32 %v966_v14, %v982_v33  ;;  %v987_v54 = vadd.s32 127, %v986_v48 }
 0x104   : > { %v903_v20 = vxor.u32 2147483648, %v1316_v24 }
 0x105   : > { %v907_v59 = vsel %vm905_vm15, %v906_v35, %v1316_v24  ;;  %v985_v46 = vor.u32 %v984_v16, %v983_v19  ;;  %v988_v40 = vshll.u32 %v987_v54, 23 }
 0x106   : > { %v904_v13 = vsel %vm902_vm0, %v1314_v32, %v903_v20 }
 0x107   : > { %v908_v56 = vsel %vm901_vm1, %v904_v13, %v907_v59  ;;  %v989_v6 = vor.u32 4788187, %v988_v40  ;;  %v992_v47 = vcvt.s32.f32 %v985_v46 }
 0x108   : > { %v909_v60 = vsel %vm899_vm2, nan, %v908_v56 }
 0x109   : > { %v990_v43 = vand.u32 2147483647, %v989_v6  ;;  %v1017_v4 = vmul.f32 %v909_v60, %v381_v45 }
 0x10b   : > { %v993_v8 = vmul.f32 %v992_v47, %v990_v43  ;;  %v1029_v37 = vmul.f32 0.1, %v1017_v4 }
 0x10d   : > { %v994_v62 = vxor.u32 2147483648, %v993_v8  ;;  %v1035_v10 = vadd.f32 %v1029_v37, %v1023_v28  ;;  %v1318_v15 = vpop.eup %1317 }
 0x10e   : > { %v383_v58 = vmul.f32 %v1318_v15, %v346_v51 }
 0x10f   : > { %v995_v30 = vsel %vm912_vm14, %v994_v62, %v993_v8  ;;  %1041 = vst [vmem:[%s1971_s18 + $0x20] sm:$0xff] %v1035_v10 }
 0x110   : > { %v998_v21 = vsel %vm911_vm3, %v1672_v25, %v995_v30  ;;  %v385_v61 = vsel %vm384_vm4, %v346_v51, %v383_v58 }
 0x111   : > { %1319 = vcosq.f32 %v998_v21  ;;  %v388_v42 = vsel %vm386_vm6, %v387_v22, %v385_v61 }
 0x112   : > { %1321 = vsinq.f32 %v998_v21 }
 0x11e   : > { %v1320_v1 = vpop.eup %1319 }
 0x11f   : > { %v1322_v49 = vpop.eup %1321  ;;  %v1009_v29 = vxor.u32 2147483648, %v1320_v1 }
 0x120   : > { %v1006_v55 = vxor.u32 2147483648, %v1322_v49 }
 0x121   : > { %v1010_v7 = vsel %vm1008_vm5, %v1009_v29, %v1322_v49 }
 0x122   : > { %v1007_v31 = vsel %vm1005_vm7, %v1320_v1, %v1006_v55 }
 0x123   : > { %v1011_v52 = vsel %vm1004_vm8, %v1007_v31, %v1010_v7 }
 0x124   : > { %v1012_v50 = vsel %vm1002_vm9, nan, %v1011_v52 }
 0x125   : > { %v1018_v53 = vmul.f32 %v1012_v50, %v388_v42 }
 0x127   : > { %v1030_v34 = vmul.f32 0.1, %v1018_v53 }
 0x129   : > { %v1036_v38 = vadd.f32 %v1030_v34, %v1024_v36 }
 0x12b   : > { %1042 = vst [vmem:[%s1971_s18 + $0x28] sm:$0xff] %v1036_v38 }
 0x12c   : > { %1364 = shalt.err (!%p1361_p3)
}
 0x12d   : > { %s1365_s3 = scalar_lea.hbm %s1058_s27, 768  ;;  %s1369_s12 = scalar_lea.hbm %s2146_s1, 1536 }
 0x12e   : > { %p1366_p5 = scmp.ne.s32.totalorder %s1058_s27, %s1365_s3  ;;  %p1370_p7 = scmp.lt.s32.totalorder %s1058_s27, %s2146_s1 }
 0x12f   : > { %p1371_p10 = scmp.lt.s32.totalorder %s1369_s12, %s1365_s3 }
 0x130   : > { %p1367_p6 = pnand %p1366_p5, %p1502_p9 }
 0x131   : > { %p1372_p13 = por %p1371_p10, %p1370_p7 }
 0x132   : > { %p1368_p4 = pneg %p1367_p6 }
 0x134   : > { %p1373_p8 = pnand %p1372_p13, %p1368_p4 }
 0x136   : > { %1376 = shalt.err (!%p1373_p8)
}
 0x137   : > { %1209 = dma.vmem_to_hbm [thread:$0]  (%p1502_p9), %s1061_s24, 768, %s1058_s27, %s1044_s28  }
 0x138 PF: > { %s1072_s16 = sand.u32 1, %s1411_s6   ;;  %p2162_p11 = scmp.ne.s32.totalorder %s2150_s21, 0 }
 0x139   : > { %p2163_p12 = scmp.ge.s32.totalorder %s1431_s11, 2  ;;  %s1073_s17 = scalar_lea.sflag [#allocation4], %s1072_s16 }
 0x13b   : > { %p1216_p0 = pnand %p2163_p12, %p2162_p11 }
 0x13d   : > { %p1217_p1 = pneg %p1216_p0 }
 0x13f   : > { %1406 = dma.done.wait (%p1217_p1), %s1073_s17, 768  }
 0x140   : > { %1408 = vsyncadd (%p1217_p1), %s1073_s17, 4294966528  ;;  %s17_s11 = sadd.s32 1, %s1431_s11   ;;  %s2164_s6 = smov %s1415_s7 }
 0x141   : > { %p14_p2 = scmp.ge.s32.totalorder %s17_s11, 4   ;;  %s2165_s7 = smov %s1419_s8 }
 0x142   : > { %s2166_s8 = smov %s1507_s20  ;;  %s2167_s9 = smov %s1427_s10 }
 0x143   : > { %s2168_s10 = smov %s2170_s14  ;;  %16 = sbr.rel (!%p14_p2) target bundleno = 6 (0x6), region = 69 }
 0x148   :  { %1078 = vsyncpa [#allocation3], 1 }
 0x149   :  { %1080 = vsyncpa [#allocation3 + $0x1], 1 }
 0x14a   :  { %1081 = vsyncpa [#allocation4], 1 }
 0x14b   :  { %1083 = vsyncpa [#allocation4 + $0x1], 1 }

</bundles_post_ra>
